<compile_context>
chip_gen: v7x
topology: tpu7x:2x2x1
jax: 0.10.0
libtpu: 0.0.40
codegen_flags: <defaults>
</compile_context>

<pallas_src>
import functools

import jax
import jax.numpy as jnp
from jax.experimental import pallas as pl
from jax.experimental.pallas import tpu as pltpu

# Deterministic "args" (module __init__ only stores hyper-parameters).
LAMBDA_L1 = 100.0
LAMBDA_ADVERSARIAL = 1.0
LAMBDA_SSIM = 0.0  # TODO(synk): ms_ssim (multi-scale SSIM) branch not implemented; gated off exactly as the reference does when lambda_SSIM == 0.

LANES = 128
TARGET_TILE_BYTES = 2 * 1024 * 1024   # per-input, per-grid-step DMA block (~2 MiB)
VMEM_LIMIT_BYTES = 32 * 1024 * 1024   # 2 inputs x 3 bufs x 2 MiB = 12 MiB + headroom


def _round_up(x, m):
    return ((x + m - 1) // m) * m


def _gloss_kernel(out_ref, tgt_ref, part_ref, *, scale, valid_rows):
    """One (tile_rows, 128) streaming step of the L1 reduction."""
    i = pl.program_id(0)
    tile_rows = out_ref.shape[0]

    # Upcast on the VPU (inputs stay in their native dtype in HBM/VMEM).
    x = out_ref[...].astype(jnp.float32)
    y = tgt_ref[...].astype(jnp.float32)
    diff = jnp.abs(x - y)                                  # (tile_rows, 128)

    # The last grid step's block may overhang the (rows, 128) array; Pallas leaves
    # the overhang undefined in VMEM, so mask rows past the true extent.  For
    # interior tiles rows_left >= tile_rows and the select is an all-true no-op.
    row = jax.lax.broadcasted_iota(jnp.int32, diff.shape, 0)
    rows_left = valid_rows - i * tile_rows
    diff = jnp.where(row < rows_left, diff, jnp.float32(0.0))

    # Sublane-aligned partial reduction (pure VPU, stays (8,128)-tiled), scaled so
    # that sum(all partials) == lambda_L1 * mean(|output - target|).
    part = jnp.sum(diff.reshape(tile_rows // 8, 8, LANES), axis=0)   # (8, 128)
    part_ref[...] = (part * jnp.float32(scale))[None]


def _image_block_spec(tile_rows, grid):
    """Streaming BlockSpec for one image input; 3-deep pipeline for long grids."""
    if grid >= 3:
        try:
            return pl.BlockSpec((tile_rows, LANES), lambda i: (i, 0),
                                pipeline_mode=pl.Buffered(3))
        except Exception:  # pipeline_mode / pl.Buffered unsupported -> default 2-deep
            pass
    return pl.BlockSpec((tile_rows, LANES), lambda i: (i, 0))


@jax.jit
def gloss(output, target, fake_logit):
    total = jnp.float32(0.0)

    if LAMBDA_L1:
        n_img = output.size
        itemsize = jnp.dtype(output.dtype).itemsize

        # Dtype-aware geometry: sublane packing is (8,128) f32 / (16,128) bf16 /
        # (32,128) int8-fp8; keep per-step DMA bytes ~constant across dtypes.
        row_align = max(8, 32 // itemsize)
        max_tile_rows = max(
            row_align,
            (TARGET_TILE_BYTES // (LANES * itemsize)) // row_align * row_align)

        rows = -(-n_img // LANES)                    # ceil(n_img / 128)
        lane_pad = rows * LANES - n_img

        out_flat = output.reshape(-1)
        tgt_flat = target.reshape(-1)
        if lane_pad:
            # Rare path: flat size not a multiple of 128.  Pad only to the next
            # lane boundary (<= 127 zeros; |0-0| = 0 so the L1 sum is unbiased and
            # the mean still uses the true n_img).  Realistic image tensors take
            # the zero-copy branch.
            out_flat = jnp.pad(out_flat, (0, lane_pad))
            tgt_flat = jnp.pad(tgt_flat, (0, lane_pad))
        out2d = out_flat.reshape(rows, LANES)        # bitcast, no copy
        tgt2d = tgt_flat.reshape(rows, LANES)

        # Tile geometry: biggest blocks that fit the budget, but keep >= 2 tiles
        # when possible so both v7x TensorCores stream HBM.
        n_tiles = -(-rows // max_tile_rows)
        if n_tiles == 1 and rows >= 2 * row_align:
            n_tiles = 2
        tile_rows = _round_up(-(-rows // n_tiles), row_align)
        grid = -(-rows // tile_rows)                 # last block may overhang (masked)

        kernel = functools.partial(
            _gloss_kernel,
            scale=float(LAMBDA_L1) / float(n_img),
            valid_rows=rows,
        )

        partials = pl.pallas_call(
            kernel,
            out_shape=jax.ShapeDtypeStruct((grid, 8, LANES), jnp.float32),
            grid=(grid,),
            in_specs=[
                _image_block_spec(tile_rows, grid),
                _image_block_spec(tile_rows, grid),
            ],
            out_specs=pl.BlockSpec((1, 8, LANES), lambda i: (i, 0, 0)),
            compiler_params=pltpu.CompilerParams(
                dimension_semantics=("parallel",),
                vmem_limit_bytes=VMEM_LIMIT_BYTES,
            ),
            cost_estimate=pl.CostEstimate(
                flops=3 * n_img,
                transcendentals=0,
                bytes_accessed=2 * n_img * itemsize + grid * 8 * LANES * 4,
            ),
        )(out2d, tgt2d)

        # Tiny final reduction over the (grid, 8, 128) scaled partials.
        total = total + jnp.sum(partials)

    if LAMBDA_ADVERSARIAL:
        # BCE-with-logits vs. ones on the (tiny) patch-discriminator logits:
        # softplus(-z) = log(1 + exp(-z)), numerically stable via logaddexp.
        z = fake_logit.astype(jnp.float32)
        total = total + jnp.float32(LAMBDA_ADVERSARIAL) * jnp.mean(
            jnp.logaddexp(jnp.float32(0.0), -z))

    # TODO(synk): lambda_SSIM * (1 - ms_ssim(output, target)) not implemented.

    return total


def _gloss_ref(output, target, fake_logit):
    """Plain-JAX reference for correctness checking."""
    out = output.astype(jnp.float32)
    tgt = target.astype(jnp.float32)
    z = fake_logit.astype(jnp.float32)
    l1 = jnp.mean(jnp.abs(out - tgt))
    bce = jnp.mean(jnp.logaddexp(0.0, -z))
    return LAMBDA_L1 * l1 + LAMBDA_ADVERSARIAL * bce


if __name__ == "__main__":
    key = jax.random.PRNGKey(0)
    keys = jax.random.split(key, 6)

    # Case 1: generator image batch (NCHW) + patch-discriminator logits.
    output = jax.random.normal(keys[0], (2, 4, 16, 16), dtype=jnp.float32)
    target = jax.random.normal(keys[1], (2, 4, 16, 16), dtype=jnp.float32)
    fake_logit = jax.random.normal(keys[2], (2, 1, 4, 4), dtype=jnp.float32)

    loss = gloss(output, target, fake_logit)
    jax.block_until_ready(loss)
    ref = _gloss_ref(output, target, fake_logit)
    assert jnp.allclose(loss, ref, rtol=1e-4, atol=1e-5), (loss, ref)

    # Case 2: flat size not a multiple of 128 (ragged lane path + masked overhang).
    output2 = jax.random.normal(keys[3], (2, 3, 5, 7), dtype=jnp.float32)
    target2 = jax.random.normal(keys[4], (2, 3, 5, 7), dtype=jnp.float32)
    fake_logit2 = jax.random.normal(keys[5], (2, 1, 3, 3), dtype=jnp.float32)

    loss2 = gloss(output2, target2, fake_logit2)
    jax.block_until_ready(loss2)
    ref2 = _gloss_ref(output2, target2, fake_logit2)
    assert jnp.allclose(loss2, ref2, rtol=1e-4, atol=1e-5), (loss2, ref2)

    # Case 3: bf16 inputs (dtype-aware 16-row alignment + in-kernel upcast).
    output3 = output.astype(jnp.bfloat16)
    target3 = target.astype(jnp.bfloat16)
    loss3 = gloss(output3, target3, fake_logit)
    jax.block_until_ready(loss3)
    ref3 = _gloss_ref(output3, target3, fake_logit)
    assert jnp.allclose(loss3, ref3, rtol=1e-3, atol=1e-4), (loss3, ref3)

    print("KERNEL_OK")
</pallas_src>

<mosaic_0001>
module attributes {stable_mosaic.version = 11 : i64} {
  func.func @_gloss_kernel(%arg0: i32, %arg1: memref<8x128xf32, #tpu.memory_space<vmem>>, %arg2: memref<8x128xf32, #tpu.memory_space<vmem>>, %arg3: memref<1x8x128xf32, #tpu.memory_space<vmem>>) attributes {dimension_semantics = [#tpu.dimension_semantics<parallel>], iteration_bounds = array<i64: 2>, scalar_prefetch = 0 : i64, scratch_operands = 0 : i64, tpu.core_type = #tpu.core_type<tc>, window_params = [{transform_indices = @transform_0, window_bounds = array<i64: 8, 128>}, {transform_indices = @transform_1, window_bounds = array<i64: 8, 128>}, {transform_indices = @transform_2, window_bounds = array<i64: 1, 8, 128>}]} {
    %c0 = arith.constant 0 : index
    %c0_0 = arith.constant 0 : index
    %0 = vector.load %arg1[%c0, %c0_0] : memref<8x128xf32, #tpu.memory_space<vmem>>, vector<8x128xf32>
    %c0_1 = arith.constant 0 : index
    %c0_2 = arith.constant 0 : index
    %1 = vector.load %arg2[%c0_1, %c0_2] : memref<8x128xf32, #tpu.memory_space<vmem>>, vector<8x128xf32>
    %2 = arith.subf %0, %1 : vector<8x128xf32>
    %3 = math.absf %2 : vector<8x128xf32>
    %4 = tpu.iota {dimensions = array<i32: 0>} : vector<8x128xi32>
    %c8_i32 = arith.constant 8 : i32
    %5 = arith.muli %arg0, %c8_i32 : i32
    %c16_i32 = arith.constant 16 : i32
    %6 = arith.subi %c16_i32, %5 : i32
    %7 = vector.broadcast %6 : i32 to vector<8x128xi32>
    %8 = arith.cmpi slt, %4, %7 : vector<8x128xi32>
    %cst = arith.constant 0.000000e+00 : f32
    %9 = vector.broadcast %cst : f32 to vector<8x128xf32>
    %10 = arith.select %8, %3, %9 : vector<8x128xi1>, vector<8x128xf32>
    %11 = vector.shape_cast %10 : vector<8x128xf32> to vector<1x8x128xf32>
    %cst_3 = arith.constant dense<0.000000e+00> : vector<8x128xf32>
    %12 = vector.multi_reduction <add>, %11, %cst_3 [0] : vector<1x8x128xf32> to vector<8x128xf32>
    %cst_4 = arith.constant 0.048828125 : f32
    %13 = vector.broadcast %cst_4 : f32 to vector<8x128xf32>
    %14 = arith.mulf %12, %13 : vector<8x128xf32>
    %15 = vector.shape_cast %14 : vector<8x128xf32> to vector<1x8x128xf32>
    %c0_5 = arith.constant 0 : index
    %c0_6 = arith.constant 0 : index
    %c0_7 = arith.constant 0 : index
    %16 = vector.load %arg3[%c0_5, %c0_6, %c0_7] : memref<1x8x128xf32, #tpu.memory_space<vmem>>, vector<1x8x128xf32>
    tpu.vector_store %arg3[%c0_5, %c0_6, %c0_7], %15 {strides = array<i32>} : memref<1x8x128xf32, #tpu.memory_space<vmem>>, vector<1x8x128xf32>,
    return
  }
  func.func @transform_0(%arg0: i32) -> (i32, i32) {
    %c0_i32 = arith.constant 0 : i32
    %c0_i32_0 = arith.constant 0 : i32
    return %arg0, %c0_i32 : i32, i32
  }
  func.func @transform_1(%arg0: i32) -> (i32, i32) {
    %c0_i32 = arith.constant 0 : i32
    %c0_i32_0 = arith.constant 0 : i32
    return %arg0, %c0_i32 : i32, i32
  }
  func.func @transform_2(%arg0: i32) -> (i32, i32, i32) {
    %c0_i32 = arith.constant 0 : i32
    %c0_i32_0 = arith.constant 0 : i32
    %c0_i32_1 = arith.constant 0 : i32
    return %arg0, %c0_i32, %c0_i32_0 : i32, i32, i32
  }
}

</mosaic_0001>

<bundles_post_ra>
// kernel: gloss.1
= control target key start
LH: loop header
LB: loop body
LE: loop exit
PB: predicated region body
PF: predicated region fallthrough
CT: control target
= control target key end

     0   :  { %s277_s9 = smov 0   ;;  %s291_s0 = inlined_call_operand.vmem [shape: f32[16,128], index: 0, kind: input, shape index: {}]   ;;  %s292_s1 = inlined_call_operand.vmem [shape: f32[16,128], index: 1, kind: input, shape index: {}]   ;;  %s293_s2 = inlined_call_operand.vmem [shape: f32[2,8,128], index: 2, kind: output, shape index: {}]  }
   0x1 LB: > { %s235_s10 = sadd.s32 4294967295, %s260_s9   ;;  %p239_p0 = scmp.ge.s32.totalorder %s260_s9, 1  ;;  %s260_s9 = sphi %s277_s9, %s12_s9  }
   0x2   : > { %p120_p1 = scmp.lt.s32.totalorder %s260_s9, 3 }
   0x4   : > { %p121_p2 = pnand %p239_p0, %p120_p1 }
   0x5   : > { %p144_p3 = scmp.lt.s32.totalorder (!%p121_p2), %s235_s10, 1  ;;  %v160_v0 = vlaneseq (!%p121_p2)  ;;  %s243_s11 = sshll.u32 (!%p121_p2), %s235_s10, 3 }
   0x6   : > { %124 = sbr.rel (%p121_p2) target bundleno = 26 (0x1a), region = 28  ;;  %s163_s12 = ssub.s32 (!%p121_p2), 16, %s243_s11 }
   0x7   : > { %v161_v1 = vshrl.u32 (!%p121_p2), %v160_v0, 7  ;;  %v164_v2 = vstv (!%p121_p2), %s163_s12 }
   0x9   : > { %vm165_vm0 = vcmp.lt.s32.totalorder (!%p121_p2), %v161_v1, %v164_v2 }
   0xd   : > { %s295_s10 = smov (!%p144_p3, %s235_s10), 1 }
   0xe   : > { %s240_s13 = sshll.u32 %s295_s10, 3 }
   0xf   : > { %s147_s16 = scalar_lea.vmem %s291_s0, %s240_s13  ;;  %s151_s19 = scalar_lea.vmem %s292_s1, %s240_s13 }
  0x10   : > { %v156_v3 = vld [vmem:[%s147_s16] sm:$0xff]  ;;  %s155_s22 = scalar_lea.vmem %s293_s2, %s240_s13 }
  0x11   : > { %v157_v4 = vld [vmem:[%s151_s19] sm:$0xff] }
  0x12   : > { %v158_v5 = vsub.f32 %v156_v3, %v157_v4 }
  0x14   : > { %v159_v6 = vand.u32 2147483647, %v158_v5 }
  0x16   : > { %v166_v7 = vsel %vm165_vm0, %v159_v6, 0.0 }
  0x17   : > { %v168_v8 = vmul.f32 0.048828125, %v166_v7 }
  0x19   : > { %169 = vst [vmem:[%s155_s22] sm:$0xff] %v168_v8 }
  0x1a PF: > { %s12_s9 = sadd.s32 1, %s260_s9  }
  0x1b   : > { %p9_p4 = scmp.ge.s32.totalorder %s12_s9, 4  }
  0x1d   :  { %11 = sbr.rel (!%p9_p4) target bundleno = 1 (0x1), region = 61 }

</bundles_post_ra>
